<compile_context>
chip_gen: v6e
topology: v6e:2x2x1
jax: 0.10.0
libtpu: 0.0.40
codegen_flags: <defaults>
</compile_context>

<pallas_src>
import jax
import jax.numpy as jnp
from jax import lax
from jax.experimental import pallas as pl
from jax.experimental.pallas import tpu as pltpu

# ---- problem sizes (small, consistent with the module) ----
G = 8               # args.grid_shape
B = 2               # batch
C1 = 4              # conv1 out channels
C2 = 4              # conv2 out channels
K = 3               # conv kernel size
H2 = G - 4          # conv2 output spatial (4)
FEAT = C2 * H2 * H2 # flattened conv feature size (64)
NA = 9              # number of actions (Linear out)
S = G * G           # flattened state size (64)
KP = 128            # lane-padded input dim  (64 features + 1 bias lane + pad)
NP = 128            # lane-padded action dim (9 -> 128)
BIAS_LANE = S       # homogeneous-coordinate lane carrying the folded bias


def _round_up(x, m):
    return ((x + m - 1) // m) * m


def dqn_affine_kernel(x_ref, w_ref, q_ref, a_ref):
    # x_ref: (BM, KP) f32  flattened one-hot state; lane BIAS_LANE == 1.0
    # w_ref: (KP, NP) f32  folded conv1∘conv2∘linear weights (+ bias row)
    # q_ref: (BM, NP) f32  lane-dense Q values (cols >= NA are zero padding)
    # a_ref: (BM, 1)  i32  fused greedy action (first max, torch semantics)
    q = jnp.dot(x_ref[...], w_ref[...], preferred_element_type=jnp.float32)
    q_ref[...] = q                                   # unmasked full-lane store

    # Fused greedy-action argmax over the NA valid lanes (first occurrence,
    # matching torch .max(1)[1]); padded lanes masked to -inf.
    col = lax.broadcasted_iota(jnp.int32, q.shape, 1)
    qm = jnp.where(col < NA, q, -jnp.inf)
    maxv = jnp.max(qm, axis=1, keepdims=True)
    cand = jnp.where(qm == maxv, col, NP)
    a_ref[...] = jnp.min(cand, axis=1, keepdims=True).astype(jnp.int32)


def _net_reference(x_nchw, w1, b1, w2, b2, wo, bo):
    """Pure-JAX forward (used both to fold the affine map and as the check)."""
    y = lax.conv_general_dilated(
        x_nchw, w1, (1, 1), 'VALID',
        dimension_numbers=('NCHW', 'OIHW', 'NCHW')) + b1.reshape(1, -1, 1, 1)
    y = lax.conv_general_dilated(
        y, w2, (1, 1), 'VALID',
        dimension_numbers=('NCHW', 'OIHW', 'NCHW')) + b2.reshape(1, -1, 1, 1)
    feat = y.reshape(y.shape[0], -1)
    return feat @ wo.T + bo


def fold_affine(w1, b1, w2, b2, wo, bo):
    """Fold conv1 -> conv2 -> linear (no activations) into one (KP, NP) matrix.

    Row BIAS_LANE carries the effective bias (homogeneous coordinate), so the
    kernel needs no separate bias operand.  Runs once per jit trace.
    """
    zero = jnp.zeros((1, 1, G, G), jnp.float32)
    b_eff = _net_reference(zero, w1, b1, w2, b2, wo, bo)              # (1, NA)
    basis = jnp.eye(S, dtype=jnp.float32).reshape(S, 1, G, G)
    w_eff = _net_reference(basis, w1, b1, w2, b2, wo, bo) - b_eff     # (S, NA)
    w_pad = (jnp.zeros((KP, NP), jnp.float32)
             .at[:S, :NA].set(w_eff)
             .at[BIAS_LANE, :NA].set(b_eff[0]))
    return w_pad


@jax.jit
def dqn_tabular_forward(x_nchw, w1, b1, w2, b2, wo, bo):
    """x_nchw: (B, 1, G, G) NCHW one-hot states.

    Returns (Q: (B, NA) float32, greedy_action: (B,) int32).
    """
    w_pad = fold_affine(w1, b1, w2, b2, wo, bo)

    nb = x_nchw.shape[0]
    x_flat = x_nchw.reshape(nb, S).astype(jnp.float32)                # (B, 64)

    # Batch tile: 128 rows per MXU pass for large batches; for the tiny demo
    # batch just round up to a sublane multiple (8).
    bm = 128 if nb >= 128 else _round_up(max(nb, 1), 8)
    nb_pad = _round_up(nb, bm)
    x_p = (jnp.zeros((nb_pad, KP), jnp.float32)
           .at[:nb, :S].set(x_flat)
           .at[:nb, BIAS_LANE].set(1.0))                              # bias lane

    q_pad, a_pad = pl.pallas_call(
        dqn_affine_kernel,
        out_shape=(jax.ShapeDtypeStruct((nb_pad, NP), jnp.float32),
                   jax.ShapeDtypeStruct((nb_pad, 1), jnp.int32)),
        grid=(nb_pad // bm,),
        in_specs=[
            pl.BlockSpec((bm, KP), lambda i: (i, 0)),   # states (lane-padded)
            pl.BlockSpec((KP, NP), lambda i: (0, 0)),   # folded weight (+bias row)
        ],
        out_specs=(pl.BlockSpec((bm, NP), lambda i: (i, 0)),   # Q (lane-dense)
                   pl.BlockSpec((bm, 1), lambda i: (i, 0))),   # greedy action
        compiler_params=pltpu.CompilerParams(
            dimension_semantics=("parallel",)),          # shard batch on v7x's 2 TCs
    )(x_p, w_pad)

    return q_pad[:nb, :NA], a_pad[:nb, 0]


def encode_state(state_idx):
    """_encode_state: one-hot grid, (B, 1, G, G) float32."""
    onehot = jax.nn.one_hot(state_idx, S, dtype=jnp.float32)          # (B, G*G)
    return onehot.reshape(-1, 1, G, G)


if __name__ == "__main__":
    key = jax.random.PRNGKey(0)
    k1, k2, k3, k4, k5, k6 = jax.random.split(key, 6)

    # Deterministic synthetic parameters (shapes from the module __init__).
    w1 = jax.random.normal(k1, (C1, 1, K, K), jnp.float32) * 0.3   # conv1 weight (OIHW)
    b1 = jax.random.normal(k2, (C1,), jnp.float32) * 0.1           # conv1 bias
    w2 = jax.random.normal(k3, (C2, C1, K, K), jnp.float32) * 0.3  # conv2 weight (OIHW)
    b2 = jax.random.normal(k4, (C2,), jnp.float32) * 0.1           # conv2 bias
    wo = jax.random.normal(k5, (NA, FEAT), jnp.float32) * 0.1      # Linear weight (out, in)
    bo = jax.random.normal(k6, (NA,), jnp.float32) * 0.1           # Linear bias

    # Deterministic "state" indices and their one-hot encoding (_encode_state).
    state_idx = jnp.array([5, 37], dtype=jnp.int32)                # B = 2 tabular states
    x = encode_state(state_idx)                                    # (B, 1, G, G)

    q, act = dqn_tabular_forward(x, w1, b1, w2, b2, wo, bo)
    q = jax.block_until_ready(q)
    act = jax.block_until_ready(act)

    # Reference: direct conv/conv/linear path.
    q_ref = _net_reference(x, w1, b1, w2, b2, wo, bo)
    act_ref = jnp.argmax(q_ref, axis=1).astype(jnp.int32)

    assert q.shape == (B, NA)
    assert act.shape == (B,)
    assert jnp.allclose(q, q_ref, atol=1e-4, rtol=1e-4)
    assert jnp.array_equal(act, act_ref)

    # TODO(synk): select_action's epsilon-greedy random exploration is host-side
    # policy logic (np.random), not part of the forward kernel.

    print("KERNEL_OK")
</pallas_src>

<mosaic_0001>
module attributes {stable_mosaic.version = 11 : i64} {
  func.func @dqn_affine_kernel(%arg0: i32, %arg1: memref<8x128xf32, #tpu.memory_space<vmem>>, %arg2: memref<128x128xf32, #tpu.memory_space<vmem>>, %arg3: memref<8x128xf32, #tpu.memory_space<vmem>>, %arg4: memref<8x1xi32, #tpu.memory_space<vmem>>) attributes {dimension_semantics = [#tpu.dimension_semantics<parallel>], iteration_bounds = array<i64: 1>, scalar_prefetch = 0 : i64, scratch_operands = 0 : i64, tpu.core_type = #tpu.core_type<tc>, window_params = [{transform_indices = @transform_0, window_bounds = array<i64: 8, 128>}, {pipeline_mode = #tpu.pipeline_mode<synchronous>, transform_indices = @transform_1, window_bounds = array<i64: 128, 128>}, {transform_indices = @transform_2, window_bounds = array<i64: 8, 128>}, {transform_indices = @transform_3, window_bounds = array<i64: 8, 1>}]} {
    %c0 = arith.constant 0 : index
    %c0_0 = arith.constant 0 : index
    %0 = vector.load %arg1[%c0, %c0_0] : memref<8x128xf32, #tpu.memory_space<vmem>>, vector<8x128xf32>
    %c0_1 = arith.constant 0 : index
    %c0_2 = arith.constant 0 : index
    %1 = vector.load %arg2[%c0_1, %c0_2] : memref<128x128xf32, #tpu.memory_space<vmem>>, vector<128x128xf32>
    %cst = arith.constant dense<0.000000e+00> : vector<8x128xf32>
    %2 = tpu.matmul %0, %1, %cst {dimension_numbers = #tpu.dot_dimension_numbers<[1], [0], [0], [1], [0, 0, 1, 1], [], []>} : vector<8x128xf32>, vector<128x128xf32>, vector<8x128xf32> -> vector<8x128xf32>
    %c0_3 = arith.constant 0 : index
    %c0_4 = arith.constant 0 : index
    %3 = vector.load %arg3[%c0_3, %c0_4] : memref<8x128xf32, #tpu.memory_space<vmem>>, vector<8x128xf32>
    tpu.vector_store %arg3[%c0_3, %c0_4], %2 {strides = array<i32>} : memref<8x128xf32, #tpu.memory_space<vmem>>, vector<8x128xf32>,
    %4 = tpu.iota {dimensions = array<i32: 1>} : vector<8x128xi32>
    %c9_i32 = arith.constant 9 : i32
    %5 = vector.broadcast %c9_i32 : i32 to vector<8x128xi32>
    %6 = arith.cmpi slt, %4, %5 : vector<8x128xi32>
    %cst_5 = arith.constant 0xFF800000 : f32
    %7 = vector.broadcast %cst_5 : f32 to vector<8x128xf32>
    %8 = arith.select %6, %2, %7 : vector<8x128xi1>, vector<8x128xf32>
    %cst_6 = arith.constant dense<0xFF800000> : vector<8xf32>
    %9 = vector.multi_reduction <maximumf>, %8, %cst_6 [1] : vector<8x128xf32> to vector<8xf32>
    %10 = vector.shape_cast %9 : vector<8xf32> to vector<8x1xf32>
    %11 = vector.broadcast %10 : vector<8x1xf32> to vector<8x128xf32>
    %12 = arith.cmpf oeq, %8, %11 : vector<8x128xf32>
    %c128_i32 = arith.constant 128 : i32
    %13 = vector.broadcast %c128_i32 : i32 to vector<8x128xi32>
    %14 = arith.select %12, %4, %13 : vector<8x128xi1>, vector<8x128xi32>
    %cst_7 = arith.constant dense<2147483647> : vector<8xi32>
    %15 = vector.multi_reduction <minsi>, %14, %cst_7 [1] : vector<8x128xi32> to vector<8xi32>
    %16 = vector.shape_cast %15 : vector<8xi32> to vector<8x1xi32>
    %c0_8 = arith.constant 0 : index
    %c0_9 = arith.constant 0 : index
    %17 = vector.load %arg4[%c0_8, %c0_9] : memref<8x1xi32, #tpu.memory_space<vmem>>, vector<8x1xi32>
    tpu.vector_store %arg4[%c0_8, %c0_9], %16 {strides = array<i32>} : memref<8x1xi32, #tpu.memory_space<vmem>>, vector<8x1xi32>,
    return
  }
  func.func @transform_0(%arg0: i32) -> (i32, i32) {
    %c0_i32 = arith.constant 0 : i32
    %c0_i32_0 = arith.constant 0 : i32
    return %arg0, %c0_i32 : i32, i32
  }
  func.func @transform_1(%arg0: i32) -> (i32, i32) {
    %c0_i32 = arith.constant 0 : i32
    %c0_i32_0 = arith.constant 0 : i32
    %c0_i32_1 = arith.constant 0 : i32
    return %c0_i32, %c0_i32_0 : i32, i32
  }
  func.func @transform_2(%arg0: i32) -> (i32, i32) {
    %c0_i32 = arith.constant 0 : i32
    %c0_i32_0 = arith.constant 0 : i32
    return %arg0, %c0_i32 : i32, i32
  }
  func.func @transform_3(%arg0: i32) -> (i32, i32) {
    %c0_i32 = arith.constant 0 : i32
    %c0_i32_0 = arith.constant 0 : i32
    return %arg0, %c0_i32 : i32, i32
  }
}

</mosaic_0001>

<bundles_post_ra>
// kernel: dqn_tabular_forward.1
= control target key start
LH: loop header
LB: loop body
LE: loop exit
PB: predicated region body
PF: predicated region fallthrough
CT: control target
= control target key end

     0   :  { %v187_v0 = vmov 0.0   ;;  %vm188_vm0 = vmmov 0   ;;  %v101_v18 = vlaneseq  ;;  %vm123_vm4 = vcmask 7168   ;;  %s266_s1 = inlined_call_operand.vmem [shape: f32[128,128], index: 1, kind: input, shape index: {}]   ;;  %s267_s0 = inlined_call_operand.vmem [shape: f32[8,128], index: 0, kind: input, shape index: {}]   ;;  %s268_s2 = inlined_call_operand.vmem [shape: f32[8,128], index: 2, kind: output, shape index: {0}]   ;;  %s269_s3 = inlined_call_operand.vmem [shape: s32[8,1], index: 3, kind: output, shape index: {1}]  }
   0x1   :  { %150 = vmatprep.subr.mxu0 %v187_v0  ;;  %v29_v1 = vld [vmem:[%s266_s1 + $0x78] sm:$0xff]  ;;  %v28_v2 = vld [vmem:[%s266_s1 + $0x70] sm:$0xff]  ;;  %182 = vmatprep.mubr.msk.f32.mxu0 %vm188_vm0, %v187_v0  ;;  %v27_v3 = vld [vmem:[%s266_s1 + $0x68] sm:$0xff] }
   0x2   :  { %151 = vmatpush3.msra.mxu0 %v29_v1  ;;  %v26_v4 = vld [vmem:[%s266_s1 + $0x60] sm:$0xff]  ;;  %v25_v5 = vld [vmem:[%s266_s1 + $0x58] sm:$0xff]  ;;  %v24_v6 = vld [vmem:[%s266_s1 + $0x50] sm:$0xff]  ;;  %v102_v19 = vand.u32 127, %v101_v18 }
   0x3   :  { %152 = vmatprep.subr.mxu0 %v187_v0  ;;  %v23_v7 = vld [vmem:[%s266_s1 + $0x48] sm:$0xff]  ;;  %v22_v8 = vld [vmem:[%s266_s1 + $0x40] sm:$0xff]  ;;  %v21_v9 = vld [vmem:[%s266_s1 + $0x38] sm:$0xff] }
   0x4   :  { %153 = vmatpush3.msra.mxu0 %v28_v2  ;;  %v20_v10 = vld [vmem:[%s266_s1 + $0x30] sm:$0xff]  ;;  %v19_v11 = vld [vmem:[%s266_s1 + $0x28] sm:$0xff]  ;;  %v18_v12 = vld [vmem:[%s266_s1 + $0x20] sm:$0xff]  ;;  %vm103_vm1 = vcmp.lt.s32.totalorder %v102_v19, 9 }
   0x5   :  { %154 = vmatprep.subr.mxu0 %v187_v0  ;;  %v17_v13 = vld [vmem:[%s266_s1 + $0x18] sm:$0xff]  ;;  %v16_v14 = vld [vmem:[%s266_s1 + $0x10] sm:$0xff]  ;;  %v15_v15 = vld [vmem:[%s266_s1 + $0x8] sm:$0xff] }
   0x6   :  { %155 = vmatpush3.msra.mxu0 %v27_v3  ;;  %v14_v16 = vld [vmem:[%s266_s1] sm:$0xff] }
   0x7   :  { %156 = vmatprep.subr.mxu0 %v187_v0  ;;  %v13_v17 = vld [vmem:[%s267_s0] sm:$0xff] }
   0x8   :  { %157 = vmatpush3.msra.mxu0 %v26_v4 }
   0x9   :  { %158 = vmatprep.subr.mxu0 %v187_v0 }
   0xa   :  { %159 = vmatpush3.msra.mxu0 %v25_v5 }
   0xb   :  { %160 = vmatprep.subr.mxu0 %v187_v0 }
   0xc   :  { %161 = vmatpush3.msra.mxu0 %v24_v6 }
   0xd   :  { %162 = vmatprep.subr.mxu0 %v187_v0 }
   0xe   :  { %163 = vmatpush3.msra.mxu0 %v23_v7 }
   0xf   :  { %164 = vmatprep.subr.mxu0 %v187_v0 }
  0x10   :  { %165 = vmatpush3.msra.mxu0 %v22_v8 }
  0x11   :  { %166 = vmatprep.subr.mxu0 %v187_v0 }
  0x12   :  { %167 = vmatpush3.msra.mxu0 %v21_v9 }
  0x13   :  { %168 = vmatprep.subr.mxu0 %v187_v0 }
  0x14   :  { %169 = vmatpush3.msra.mxu0 %v20_v10 }
  0x15   :  { %170 = vmatprep.subr.mxu0 %v187_v0 }
  0x16   :  { %171 = vmatpush3.msra.mxu0 %v19_v11 }
  0x17   :  { %172 = vmatprep.subr.mxu0 %v187_v0 }
  0x18   :  { %173 = vmatpush3.msra.mxu0 %v18_v12 }
  0x19   :  { %174 = vmatprep.subr.mxu0 %v187_v0 }
  0x1a   :  { %175 = vmatpush3.msra.mxu0 %v17_v13 }
  0x1b   :  { %176 = vmatprep.subr.mxu0 %v187_v0 }
  0x1c   :  { %177 = vmatpush3.msra.mxu0 %v16_v14 }
  0x1d   :  { %178 = vmatprep.subr.mxu0 %v187_v0 }
  0x1e   :  { %179 = vmatpush3.msra.mxu0 %v15_v15 }
  0x1f   :  { %180 = vmatprep.subr.mxu0 %v187_v0 }
  0x20   :  { %181 = vmatpush3.msra.mxu0 %v14_v16 }
  0x21   :  { %183 = vmatmul.mubr.f32.vlgmr.msra.gmra.mxu0 %v13_v17 }
  0xe1   :  { %v96_v20 = vpop.f32.mrf.mxu0 }
  0xe2   :  { %100 = vst [vmem:[%s268_s2] sm:$0xff] %v96_v20  ;;  %v104_v21 = vsel %vm103_vm1, %v96_v20, -inf }
  0xe3   :  { %105 = vmax.xlane.f32.xlu0 %v104_v21  ;;  %v184_v22 = vpop.f32.mrf.mxu0 }
 0x16c   :  { %v106_v23 = vpop.xlane.xlu0 %105 }
 0x16d   :  { %vm107_vm2 = vcmp.eq.f32.partialorder %v104_v21, %v106_v23 }
 0x16e   :  { %v108_v24 = vsel %vm107_vm2, %v102_v19, 128 }
 0x16f   :  { %v110_v25 = vshra.s32 %v108_v24, 16  ;;  %v109_v27 = vand.u32 65535, %v108_v24 }
 0x171   :  { %v112_v26 = vcvt.s32.f32 %v110_v25  ;;  %v111_v29 = vcvt.s32.f32 %v109_v27 }
 0x173   :  { %113 = vmin.xlane.f32.xlu0 %v112_v26 }
 0x1fc   :  { %v114_v28 = vpop.xlane.xlu0 %113 }
 0x1fd   :  { %vm115_vm3 = vcmp.eq.f32.partialorder %v112_v26, %v114_v28  ;;  %v120_v31 = vcvt.f32.s32 %v114_v28 }
 0x1fe   :  { %v116_v30 = vsel %vm115_vm3, %v111_v29, inf }
 0x1ff   :  { %117 = vmin.xlane.f32.xlu1 %v116_v30  ;;  %v121_v33 = vshll.u32 %v120_v31, 16 }
 0x288   :  { %v118_v32 = vpop.xlane.xlu1 %117 }
 0x289   :  { %v119_v34 = vcvt.f32.s32 %v118_v32 }
 0x28b   :  { %v122_v35 = vadd.s32 %v121_v33, %v119_v34 }
 0x28d   :  { %124 = vst.msk [vmem:[%s269_s3] sm:$0xff] %vm123_vm4, %v122_v35 }

</bundles_post_ra>
